<compile_context>
chip_gen: v7x
topology: tpu7x:2x2x1
jax: 0.10.0
libtpu: 0.0.40
codegen_flags: <defaults>
</compile_context>

<pallas_src>
import functools

import jax
import jax.numpy as jnp
from jax import lax
from jax.experimental import pallas as pl
from jax.experimental.pallas import tpu as pltpu

_EPS = 1e-10
_NEG_FILL = -1e30  # class-padding value: contributes ~0 probability, never argmax


def _softmax_rows(x, out_ref, hard):
    """Row softmax (axis=1 == lane axis) with optional hard one-hot output."""
    x_max = jnp.max(x, axis=1, keepdims=True)
    e = jnp.exp(x - x_max)
    denom = jnp.sum(e, axis=1, keepdims=True)
    # Multiply by the (approximate, EUP) reciprocal instead of a per-element
    # divide; the reciprocal touches only one value per row.
    y = e * pl.reciprocal(denom, approx=True)
    if hard:
        # softmax is monotone, so argmax(x) == argmax(y): reuse the x row-max
        # (saves an extra XLU reduction over y) and emit an exact one-hot.
        n_class = x.shape[1]
        col = lax.broadcasted_iota(jnp.int32, x.shape, 1)
        first_idx = jnp.min(jnp.where(x == x_max, col, n_class),
                            axis=1, keepdims=True)
        y = (col == first_idx).astype(jnp.float32)
    out_ref[...] = y.astype(out_ref.dtype)


def _gs_train_kernel(logits_ref, u_ref, out_ref, *, inv_temp, hard):
    logits = logits_ref[...].astype(jnp.float32)
    u = u_ref[...].astype(jnp.float32)
    noise = -jnp.log(_EPS - jnp.log(u + _EPS))
    x = logits + noise
    if inv_temp != 1.0:           # compile-time constant multiply, not a divide
        x = x * inv_temp
    _softmax_rows(x, out_ref, hard)


def _gs_eval_kernel(logits_ref, out_ref, *, hard):
    _softmax_rows(logits_ref[...].astype(jnp.float32), out_ref, hard)


def _choose_block_rows(batch, c_pad, n_streams):
    """Largest row-tile (multiple of 8, <=1024) whose double-buffered f32
    tiles for all streamed arrays stay well under the smallest default
    scoped-VMEM budget (16 MiB on v5e)."""
    budget = 8 * 1024 * 1024
    bytes_per_row = c_pad * 4 * n_streams * 2     # f32, double-buffered
    tb = max(8, min(1024, (budget // bytes_per_row) // 8 * 8))
    return batch if batch <= tb else tb


def gumbel_softmax(logits, key=None, *, temperature=1.0, hard=False,
                   training=True):
    """Forward pass of the PyTorch GumbleSoftmax module.

    logits: [batch, n_class].  In training mode Gumbel noise (from uniform
    samples drawn with `key`) is added before the row softmax; if `hard` the
    forward value is the one-hot of the row argmax.
    """
    B, C = logits.shape
    # Keep the output lane-dense: pad the class axis to a multiple of 128.
    c_pad = max(128, ((C + 127) // 128) * 128)
    if c_pad != C:
        logits = jnp.pad(logits, ((0, 0), (0, c_pad - C)),
                         constant_values=_NEG_FILL)

    n_streams = 3 if training else 2
    tb = _choose_block_rows(B, c_pad, n_streams)
    grid = (pl.cdiv(B, tb),)
    blk = pl.BlockSpec((tb, c_pad), lambda i: (i, 0))
    cparams = pltpu.CompilerParams(dimension_semantics=("parallel",))

    if training:
        if key is None:
            key = jax.random.PRNGKey(0)
        u = jax.random.uniform(key, (B, c_pad), dtype=jnp.float32)
        kernel = functools.partial(_gs_train_kernel,
                                   inv_temp=float(1.0 / temperature),
                                   hard=bool(hard))
        y = pl.pallas_call(
            kernel,
            out_shape=jax.ShapeDtypeStruct((B, c_pad), logits.dtype),
            grid=grid,
            in_specs=[blk, blk],
            out_specs=blk,
            compiler_params=cparams,
        )(logits, u)
    else:
        kernel = functools.partial(_gs_eval_kernel, hard=bool(hard))
        y = pl.pallas_call(
            kernel,
            out_shape=jax.ShapeDtypeStruct((B, c_pad), logits.dtype),
            grid=grid,
            in_specs=[blk],
            out_specs=blk,
            compiler_params=cparams,
        )(logits)

    return y[:, :C] if c_pad != C else y


if __name__ == "__main__":
    key = jax.random.PRNGKey(0)
    k_logits, k_noise, k_small = jax.random.split(key, 3)

    B, C = 16, 128  # [batch_size, n_class], lane-dense class axis
    logits = jax.random.normal(k_logits, (B, C), dtype=jnp.float32)

    # Default module config: hard=False, temperature=1, training mode.
    y = jax.block_until_ready(
        gumbel_softmax(logits, k_noise, temperature=1.0, hard=False,
                       training=True))
    assert y.shape == (B, C)
    row_sums = jnp.sum(y, axis=1)
    # approx reciprocal => slightly relaxed row-sum tolerance
    assert bool(jnp.all(jnp.abs(row_sums - 1.0) < 1e-2))
    assert bool(jnp.all(y >= 0.0))

    # Reference check: the uniform noise is fed from the host, so the whole
    # forward can be reproduced in plain JAX.
    u = jax.random.uniform(k_noise, (B, C), dtype=jnp.float32)
    noise = -jnp.log(_EPS - jnp.log(u + _EPS))
    y_ref = jax.nn.softmax(logits + noise, axis=1)
    assert bool(jnp.max(jnp.abs(y - y_ref)) < 2e-2)

    # Hard (straight-through) branch: rows are exact one-hots.
    y_hard = jax.block_until_ready(
        gumbel_softmax(logits, k_noise, hard=True, training=True))
    assert bool(jnp.all(jnp.sum(y_hard, axis=1) == 1.0))
    assert bool(jnp.all(jnp.max(y_hard, axis=1) == 1.0))

    # Eval branch: plain softmax, no noise.
    y_eval = jax.block_until_ready(
        gumbel_softmax(logits, hard=False, training=False))
    assert bool(jnp.max(jnp.abs(y_eval - jax.nn.softmax(logits, axis=1))) < 2e-2)

    # Small, non-lane-aligned class count exercises the lane-padding path.
    logits_small = jax.random.normal(k_small, (4, 10), dtype=jnp.float32)
    y_small = jax.block_until_ready(
        gumbel_softmax(logits_small, k_noise, hard=False, training=True))
    assert y_small.shape == (4, 10)
    assert bool(jnp.all(jnp.abs(jnp.sum(y_small, axis=1) - 1.0) < 1e-2))

    print("KERNEL_OK")
</pallas_src>

<mosaic_0001>
module attributes {stable_mosaic.version = 11 : i64} {
  func.func @_gs_train_kernel(%arg0: i32, %arg1: memref<16x128xf32, #tpu.memory_space<vmem>>, %arg2: memref<16x128xf32, #tpu.memory_space<vmem>>, %arg3: memref<16x128xf32, #tpu.memory_space<vmem>>) attributes {dimension_semantics = [#tpu.dimension_semantics<parallel>], iteration_bounds = array<i64: 1>, scalar_prefetch = 0 : i64, scratch_operands = 0 : i64, tpu.core_type = #tpu.core_type<tc>, window_params = [{transform_indices = @transform_0, window_bounds = array<i64: 16, 128>}, {transform_indices = @transform_1, window_bounds = array<i64: 16, 128>}, {transform_indices = @transform_2, window_bounds = array<i64: 16, 128>}]} {
    %c0 = arith.constant 0 : index
    %c0_0 = arith.constant 0 : index
    %0 = vector.load %arg1[%c0, %c0_0] : memref<16x128xf32, #tpu.memory_space<vmem>>, vector<16x128xf32>
    %c0_1 = arith.constant 0 : index
    %c0_2 = arith.constant 0 : index
    %1 = vector.load %arg2[%c0_1, %c0_2] : memref<16x128xf32, #tpu.memory_space<vmem>>, vector<16x128xf32>
    %cst = arith.constant 1.000000e-10 : f32
    %2 = vector.broadcast %cst : f32 to vector<16x128xf32>
    %3 = arith.addf %1, %2 : vector<16x128xf32>
    %4 = math.log %3 : vector<16x128xf32>
    %cst_3 = arith.constant 1.000000e-10 : f32
    %5 = vector.broadcast %cst_3 : f32 to vector<16x128xf32>
    %6 = arith.subf %5, %4 : vector<16x128xf32>
    %7 = math.log %6 : vector<16x128xf32>
    %cst_4 = arith.constant 0.000000e+00 : f32
    %8 = vector.broadcast %cst_4 : f32 to vector<16x128xf32>
    %9 = arith.subf %8, %7 : vector<16x128xf32>
    %10 = arith.addf %0, %9 : vector<16x128xf32>
    %cst_5 = arith.constant dense<0xFF800000> : vector<16xf32>
    %11 = vector.multi_reduction <maximumf>, %10, %cst_5 [1] : vector<16x128xf32> to vector<16xf32>
    %12 = vector.shape_cast %11 : vector<16xf32> to vector<16x1xf32>
    %13 = vector.broadcast %12 : vector<16x1xf32> to vector<16x128xf32>
    %14 = arith.subf %10, %13 : vector<16x128xf32>
    %15 = math.exp %14 : vector<16x128xf32>
    %cst_6 = arith.constant dense<0.000000e+00> : vector<16xf32>
    %16 = vector.multi_reduction <add>, %15, %cst_6 [1] : vector<16x128xf32> to vector<16xf32>
    %17 = vector.shape_cast %16 : vector<16xf32> to vector<16x1xf32>
    %18 = tpu.reciprocal %17 {approx = true} : vector<16x1xf32> -> vector<16x1xf32>
    %19 = vector.broadcast %18 : vector<16x1xf32> to vector<16x128xf32>
    %20 = arith.mulf %15, %19 : vector<16x128xf32>
    %c0_7 = arith.constant 0 : index
    %c0_8 = arith.constant 0 : index
    %21 = vector.load %arg3[%c0_7, %c0_8] : memref<16x128xf32, #tpu.memory_space<vmem>>, vector<16x128xf32>
    tpu.vector_store %arg3[%c0_7, %c0_8], %20 {strides = array<i32>} : memref<16x128xf32, #tpu.memory_space<vmem>>, vector<16x128xf32>,
    return
  }
  func.func @transform_0(%arg0: i32) -> (i32, i32) {
    %c0_i32 = arith.constant 0 : i32
    %c0_i32_0 = arith.constant 0 : i32
    return %arg0, %c0_i32 : i32, i32
  }
  func.func @transform_1(%arg0: i32) -> (i32, i32) {
    %c0_i32 = arith.constant 0 : i32
    %c0_i32_0 = arith.constant 0 : i32
    return %arg0, %c0_i32 : i32, i32
  }
  func.func @transform_2(%arg0: i32) -> (i32, i32) {
    %c0_i32 = arith.constant 0 : i32
    %c0_i32_0 = arith.constant 0 : i32
    return %arg0, %c0_i32 : i32, i32
  }
}

</mosaic_0001>

<bundles_post_ra>
// kernel: tpu_custom_call.1
= control target key start
LH: loop header
LB: loop body
LE: loop exit
PB: predicated region body
PF: predicated region fallthrough
CT: control target
= control target key end

     0   :  { %7 = vsyncpa [#allocation3], 0  ;;  %s256_s0 = inlined_call_operand.hbm [shape: f32[16,128], index: 0, kind: input, shape index: {}]   ;;  %s257_s1 = inlined_call_operand.hbm [shape: f32[16,128], index: 1, kind: input, shape index: {}]   ;;  %s258_s2 = inlined_call_operand.hbm [shape: f32[16,128], index: 2, kind: output, shape index: {}]  }
   0x1   :  { %8 = vsyncpa [#allocation6], 0 }
   0x2   :  { %9 = vsyncpa [#allocation4], 0  ;;  %s191_s9 = smov [#allocation2]   ;;  %s119_s13 = scalar_lea.hbm %s256_s0, 256 }
   0x3   :  { %s15_s10 = sshll.u32 %s191_s9, 4  ;;  %p120_p0 = scmp.ne.s32.totalorder %s256_s0, %s119_s13  ;;  %s16_s10 = int_to_ptr.vmem [resolvable:$true] %s15_s10 }
   0x4   :  { %p123_p1 = scmp.lt.u32.totalorder %s119_s13, %s256_s0 }
   0x6   :  { %p125_p2 = pnand %p123_p1, %p120_p0 }
   0x8   :  { %128 = shalt.err (!%p125_p2)
}
   0x9   :  { %s129_s18 = scalar_lea.vmem %s16_s10, 256  ;;  %p134_p4 = scmp.lt.s32.totalorder %s16_s10, %s16_s10 }
   0xa   :  { %p130_p3 = scmp.ne.s32.totalorder %s16_s10, %s129_s18  ;;  %p135_p5 = scmp.lt.s32.totalorder %s129_s18, %s129_s18 }
   0xc   :  { %p136_p6 = por %p135_p5, %p134_p4 }
   0xe   :  { %p137_p7 = pnand %p136_p6, %p130_p3 }
  0x10   :  { %140 = shalt.err (!%p137_p7)
}
  0x11   :  { %s192_s19 = smov 128   ;;  %s193_s20 = smov 8  }
  0x12   :  { %21 = dma.hbm_to_vmem [thread:$0]  %s256_s0, 256, %s16_s10, [#allocation3], %s192_s19, %s192_s19, %s193_s20  }
  0x13   :  { %s194_s23 = smov [#allocation5]   ;;  %s141_s27 = scalar_lea.hbm %s257_s1, 256 }
  0x14   :  { %s27_s24 = sshll.u32 %s194_s23, 4  ;;  %p142_p8 = scmp.ne.s32.totalorder %s257_s1, %s141_s27  ;;  %s28_s24 = int_to_ptr.vmem [resolvable:$true] %s27_s24 }
  0x15   :  { %p145_p9 = scmp.lt.u32.totalorder %s141_s27, %s257_s1 }
  0x17   :  { %p147_p10 = pnand %p145_p9, %p142_p8 }
  0x19   :  { %150 = shalt.err (!%p147_p10)
}
  0x1a   :  { %s151_s4 = scalar_lea.vmem %s28_s24, 256  ;;  %p156_p12 = scmp.lt.s32.totalorder %s28_s24, %s28_s24 }
  0x1b   :  { %p152_p11 = scmp.ne.s32.totalorder %s28_s24, %s151_s4  ;;  %p157_p13 = scmp.lt.s32.totalorder %s151_s4, %s151_s4 }
  0x1d   :  { %p158_p0 = por %p157_p13, %p156_p12 }
  0x1f   :  { %p159_p1 = pnand %p158_p0, %p152_p11 }
  0x21   :  { %162 = shalt.err (!%p159_p1)
}
  0x22   :  { %33 = dma.hbm_to_vmem [thread:$0]  %s257_s1, 256, %s28_s24, [#allocation6], %s192_s19, %s192_s19, %s193_s20  }
  0x23   :  { %185 = dma.done.wait [#allocation3], 256  }
  0x24   :  { %186 = vsyncadd [#allocation3], 4294967040 }
  0x25   :  { %187 = dma.done.wait [#allocation6], 256  }
  0x26   :  { %188 = vsyncadd [#allocation6], 4294967040  ;;  %v42_v0 = vld [vmem:[#allocation5] sm:$0xff]  ;;  %v43_v2 = vld [vmem:[#allocation5 + $0x8] sm:$0xff]  ;;  %s195_s1 = smov [#allocation7]  }
  0x27   :  { %v44_v1 = vadd.f32 1e-10, %v42_v0  ;;  %v45_v3 = vadd.f32 1e-10, %v43_v2  ;;  %v40_v13 = vld [vmem:[#allocation2] sm:$0xff]  ;;  %v41_v16 = vld [vmem:[#allocation2 + $0x8] sm:$0xff] }
  0x28   :  { %s85_s6 = sshll.u32 %s195_s1, 4  ;;  %s86_s6 = int_to_ptr.vmem [resolvable:$true] %s85_s6 }
  0x29   :  { %103 = vlog2.f32 %v44_v1  ;;  %s163_s7 = scalar_lea.vmem %s86_s6, 256  ;;  %p168_p3 = scmp.lt.s32.totalorder %s86_s6, %s86_s6 }
  0x2a   :  { %105 = vlog2.f32 %v45_v3  ;;  %p164_p2 = scmp.ne.s32.totalorder %s86_s6, %s163_s7  ;;  %p169_p4 = scmp.lt.s32.totalorder %s163_s7, %s163_s7 }
  0x2c   :  { %p170_p5 = por %p169_p4, %p168_p3 }
  0x2e   :  { %p171_p6 = pnand %p170_p5, %p164_p2 }
  0x33   :  { %v104_v4 = vpop.eup %103 }
  0x34   :  { %v106_v5 = vpop.eup %105  ;;  %v47_v6 = vmul.f32 0.6931472, %v104_v4 }
  0x35   :  { %v49_v7 = vmul.f32 0.6931472, %v106_v5 }
  0x36   :  { %v50_v8 = vsub.f32 1e-10, %v47_v6 }
  0x37   :  { %v51_v9 = vsub.f32 1e-10, %v49_v7 }
  0x38   :  { %107 = vlog2.f32 %v50_v8 }
  0x39   :  { %109 = vlog2.f32 %v51_v9 }
  0x42   :  { %v108_v10 = vpop.eup %107 }
  0x43   :  { %v110_v11 = vpop.eup %109  ;;  %v53_v12 = vmul.f32 0.6931472, %v108_v10 }
  0x44   :  { %v55_v14 = vmul.f32 0.6931472, %v110_v11 }
  0x45   :  { %v56_v15 = vsub.f32 0.0, %v53_v12 }
  0x46   :  { %v57_v17 = vsub.f32 0.0, %v55_v14 }
  0x47   :  { %v58_v18 = vadd.f32 %v56_v15, %v40_v13 }
  0x48   :  { %v59_v19 = vadd.f32 %v57_v17, %v41_v16 }
  0x49   :  { %60 = vmax.xlane.f32.xlu0 %v58_v18 }
  0x4d   :  { %62 = vmax.xlane.f32.xlu0 %v59_v19 }
  0xd6   :  { %v61_v20 = vpop.xlane.xlu0 %60 }
  0xd7   :  { %v64_v21 = vsub.f32 %v58_v18, %v61_v20 }
  0xd9   :  { %v66_v22 = vmul.f32 1.442695, %v64_v21 }
  0xda   :  { %v63_v23 = vpop.xlane.xlu0 %62 }
  0xdb   :  { %111 = vpow2.f32 %v66_v22  ;;  %v65_v24 = vsub.f32 %v59_v19, %v63_v23 }
  0xdd   :  { %v68_v25 = vmul.f32 1.442695, %v65_v24 }
  0xdf   :  { %113 = vpow2.f32 %v68_v25 }
  0xe5   :  { %v112_v26 = vpop.eup %111 }
  0xe6   :  { %70 = vadd.xlane.f32.xlu1 %v112_v26 }
  0xe9   :  { %v114_v27 = vpop.eup %113 }
  0xea   :  { %72 = vadd.xlane.f32.xlu1 %v114_v27 }
 0x173   :  { %v71_v28 = vpop.xlane.xlu1 %70 }
 0x174   :  { %115 = vrcp.f32 %v71_v28 }
 0x177   :  { %v73_v29 = vpop.xlane.xlu1 %72 }
 0x178   :  { %117 = vrcp.f32 %v73_v29 }
 0x17e   :  { %v116_v30 = vpop.eup %115 }
 0x17f   :  { %v76_v31 = vmul.f32 %v116_v30, %v112_v26 }
 0x181   :  { %78 = vst [vmem:[#allocation7] sm:$0xff] %v76_v31 }
 0x182   :  { %v118_v32 = vpop.eup %117 }
 0x183   :  { %v77_v33 = vmul.f32 %v118_v32, %v114_v27 }
 0x185   :  { %79 = vst [vmem:[#allocation7 + $0x8] sm:$0xff] %v77_v33 }
 0x186   :  { %174 = shalt.err (!%p171_p6)
}
 0x187   :  { %s175_s10 = scalar_lea.hbm %s258_s2, 256 }
 0x188   :  { %p176_p7 = scmp.ne.s32.totalorder %s258_s2, %s175_s10  ;;  %p179_p8 = scmp.lt.u32.totalorder %s175_s10, %s258_s2 }
 0x18a   :  { %p181_p9 = pnand %p179_p8, %p176_p7 }
 0x18c   :  { %184 = shalt.err (!%p181_p9)
}
 0x18d   :  { %91 = dma.vmem_to_hbm [thread:$0]  %s86_s6, 256, %s258_s2, [#allocation4], %s192_s19, %s192_s19, %s193_s20  }
 0x18e   :  { %189 = dma.done.wait [#allocation4], 256  }
 0x18f   :  { %190 = vsyncadd [#allocation4], 4294967040 }
 0x190   :  { %95 = vsyncpa [#allocation3], 1 }
 0x191   :  { %96 = vsyncpa [#allocation6], 1 }
 0x192   :  { %97 = vsyncpa [#allocation4], 1 }

</bundles_post_ra>
